<compile_context>
chip_gen: v6e
topology: v6e:2x2x1
jax: 0.10.0
libtpu: 0.0.40
codegen_flags: <defaults>
</compile_context>

<pallas_src>
import math

import jax
import jax.numpy as jnp
from jax.experimental import pallas as pl
from jax.experimental.pallas import tpu as pltpu

MATMUL_DTYPE = jnp.float32   # set to jnp.bfloat16 on v6e/v7x at production D
LANE = 128                   # lane-pad granularity (use 256-multiples of D/D_ff
                             # at production sizes for full v6e/v7x MXU passes)
TILE_M_MAX = 512             # row tile: multiple of 128 (v5e) and 256 (v6e/v7x)


def _round_up(x, m):
    return (x + m - 1) // m * m


def _row_tiling(m):
    """(padded_rows, tile_rows, num_tiles) for the flattened row axis."""
    m8 = _round_up(max(m, 1), 8)                 # sublane alignment
    if m8 <= TILE_M_MAX:
        return m8, m8, 1
    m_pad = _round_up(m, TILE_M_MAX)
    return m_pad, TILE_M_MAX, m_pad // TILE_M_MAX


# ---------------------------------------------------------------------------
# Kernel: one row tile per grid step; weights stay VMEM-resident.
# ---------------------------------------------------------------------------

def _ffn_kernel(x_ref, w1_ref, b1_ref, w2_ref, b2_ref, o_ref):
    x = x_ref[...].astype(MATMUL_DTYPE)          # no-op when dtypes match
    h = jnp.dot(x, w1_ref[...], preferred_element_type=jnp.float32)
    h = jnp.maximum(h + b1_ref[...], 0.0)        # bias + ReLU on the VPU (f32)
    y = jnp.dot(h.astype(MATMUL_DTYPE), w2_ref[...],
                preferred_element_type=jnp.float32)
    y = y + b2_ref[...]
    o_ref[...] = y.astype(o_ref.dtype)           # lane-dense (TILE_M, 128k) store


# ---------------------------------------------------------------------------
# Wrapper: flatten rows, pad to lane/sublane multiples, tile the row axis.
# ---------------------------------------------------------------------------

def feedforward(x, packed):
    """x: (..., d_model) -> (..., d_model), Linear -> ReLU -> Linear."""
    w1, b1, w2, b2 = packed["w1"], packed["b1"], packed["w2"], packed["b2"]
    d_pad, dff_pad = w1.shape
    d_model = x.shape[-1]
    assert d_model <= d_pad

    lead = x.shape[:-1]
    m = math.prod(lead)
    x2 = x.reshape(m, d_model)

    m_pad, tile_m, grid_m = _row_tiling(m)
    x_p = jnp.pad(x2, ((0, m_pad - m), (0, d_pad - d_model)))

    flops = 4 * m_pad * d_pad * dff_pad          # two matmuls, 2*M*K*N each
    bytes_accessed = (
        x_p.size * x_p.dtype.itemsize            # activation in
        + m_pad * d_pad * x.dtype.itemsize       # activation out
        + w1.size * w1.dtype.itemsize + w2.size * w2.dtype.itemsize
        + b1.size * b1.dtype.itemsize + b2.size * b2.dtype.itemsize)

    out = pl.pallas_call(
        _ffn_kernel,
        out_shape=jax.ShapeDtypeStruct((m_pad, d_pad), x.dtype),
        grid=(grid_m,),
        in_specs=[
            pl.BlockSpec((tile_m, d_pad), lambda i: (i, 0)),    # activation tile
            pl.BlockSpec((d_pad, dff_pad), lambda i: (0, 0)),   # resident W1
            pl.BlockSpec((1, dff_pad), lambda i: (0, 0)),       # resident b1
            pl.BlockSpec((dff_pad, d_pad), lambda i: (0, 0)),   # resident W2
            pl.BlockSpec((1, d_pad), lambda i: (0, 0)),         # resident b2
        ],
        out_specs=pl.BlockSpec((tile_m, d_pad), lambda i: (i, 0)),
        compiler_params=pltpu.CompilerParams(
            dimension_semantics=("parallel",)),
        cost_estimate=pl.CostEstimate(flops=flops, transcendentals=0,
                                      bytes_accessed=bytes_accessed),
    )(x_p, w1, b1, w2, b2)

    return out[:m, :d_model].reshape(lead + (d_model,))


# ---------------------------------------------------------------------------
# Parameters: raw (PyTorch-Linear-like) init + one-time host-side packing
# (pad to lane multiples, pre-cast weights to MATMUL_DTYPE).
# ---------------------------------------------------------------------------

def init_feedforward_params(key, d_model, d_ff):
    k1, k2, k3, k4 = jax.random.split(key, 4)
    lim1 = 1.0 / math.sqrt(d_model)
    lim2 = 1.0 / math.sqrt(d_ff)
    return {
        "w1": jax.random.uniform(k1, (d_model, d_ff), jnp.float32, -lim1, lim1),
        "b1": jax.random.uniform(k2, (d_ff,), jnp.float32, -lim1, lim1),
        "w2": jax.random.uniform(k3, (d_ff, d_model), jnp.float32, -lim2, lim2),
        "b2": jax.random.uniform(k4, (d_model,), jnp.float32, -lim2, lim2),
    }


def pack_feedforward_params(raw, d_model, d_ff):
    d_pad = _round_up(d_model, LANE)
    dff_pad = _round_up(d_ff, LANE)
    w1 = jnp.pad(raw["w1"], ((0, d_pad - d_model), (0, dff_pad - d_ff)))
    w2 = jnp.pad(raw["w2"], ((0, dff_pad - d_ff), (0, d_pad - d_model)))
    b1 = jnp.pad(raw["b1"], (0, dff_pad - d_ff)).reshape(1, dff_pad)
    b2 = jnp.pad(raw["b2"], (0, d_pad - d_model)).reshape(1, d_pad)
    return {
        "w1": w1.astype(MATMUL_DTYPE),
        "w2": w2.astype(MATMUL_DTYPE),
        "b1": b1.astype(jnp.float32),   # biases stay f32 (added to f32 accum)
        "b2": b2.astype(jnp.float32),
    }


def feedforward_reference(x, raw):
    h = jnp.maximum(jnp.einsum("...d,df->...f", x, raw["w1"]) + raw["b1"], 0.0)
    return jnp.einsum("...f,fd->...d", h, raw["w2"]) + raw["b2"]


# ---------------------------------------------------------------------------
if __name__ == "__main__":
    B, T, D_MODEL, D_FF = 2, 8, 32, 64

    key = jax.random.PRNGKey(0)
    kx, kp = jax.random.split(key)
    x = jax.random.normal(kx, (B, T, D_MODEL), dtype=jnp.float32)

    raw = init_feedforward_params(kp, D_MODEL, D_FF)
    packed = pack_feedforward_params(raw, D_MODEL, D_FF)

    fwd = jax.jit(feedforward)
    out = jax.block_until_ready(fwd(x, packed))

    assert out.shape == (B, T, D_MODEL), out.shape
    assert bool(jnp.all(jnp.isfinite(out)))

    ref = feedforward_reference(x, raw)
    tol = 1e-5 if MATMUL_DTYPE == jnp.float32 else 2e-2
    assert bool(jnp.allclose(out, ref, rtol=tol, atol=tol)), \
        float(jnp.max(jnp.abs(out - ref)))

    print("KERNEL_OK")
</pallas_src>

<mosaic_0001>
module attributes {stable_mosaic.version = 11 : i64} {
  func.func @_ffn_kernel(%arg0: i32, %arg1: memref<16x128xf32, #tpu.memory_space<vmem>>, %arg2: memref<128x128xf32, #tpu.memory_space<vmem>>, %arg3: memref<1x128xf32, #tpu.memory_space<vmem>>, %arg4: memref<128x128xf32, #tpu.memory_space<vmem>>, %arg5: memref<1x128xf32, #tpu.memory_space<vmem>>, %arg6: memref<16x128xf32, #tpu.memory_space<vmem>>) attributes {dimension_semantics = [#tpu.dimension_semantics<parallel>], iteration_bounds = array<i64: 1>, scalar_prefetch = 0 : i64, scratch_operands = 0 : i64, tpu.core_type = #tpu.core_type<tc>, window_params = [{transform_indices = @transform_0, window_bounds = array<i64: 16, 128>}, {pipeline_mode = #tpu.pipeline_mode<synchronous>, transform_indices = @transform_1, window_bounds = array<i64: 128, 128>}, {pipeline_mode = #tpu.pipeline_mode<synchronous>, transform_indices = @transform_2, window_bounds = array<i64: 1, 128>}, {pipeline_mode = #tpu.pipeline_mode<synchronous>, transform_indices = @transform_3, window_bounds = array<i64: 128, 128>}, {pipeline_mode = #tpu.pipeline_mode<synchronous>, transform_indices = @transform_4, window_bounds = array<i64: 1, 128>}, {transform_indices = @transform_5, window_bounds = array<i64: 16, 128>}]} {
    %c0 = arith.constant 0 : index
    %c0_0 = arith.constant 0 : index
    %0 = vector.load %arg1[%c0, %c0_0] : memref<16x128xf32, #tpu.memory_space<vmem>>, vector<16x128xf32>
    %c0_1 = arith.constant 0 : index
    %c0_2 = arith.constant 0 : index
    %1 = vector.load %arg2[%c0_1, %c0_2] : memref<128x128xf32, #tpu.memory_space<vmem>>, vector<128x128xf32>
    %cst = arith.constant dense<0.000000e+00> : vector<16x128xf32>
    %2 = tpu.matmul %0, %1, %cst {dimension_numbers = #tpu.dot_dimension_numbers<[1], [0], [0], [1], [0, 0, 1, 1], [], []>} : vector<16x128xf32>, vector<128x128xf32>, vector<16x128xf32> -> vector<16x128xf32>
    %c0_3 = arith.constant 0 : index
    %c0_4 = arith.constant 0 : index
    %3 = vector.load %arg3[%c0_3, %c0_4] : memref<1x128xf32, #tpu.memory_space<vmem>>, vector<1x128xf32>
    %4 = vector.broadcast %3 : vector<1x128xf32> to vector<16x128xf32>
    %5 = arith.addf %2, %4 : vector<16x128xf32>
    %cst_5 = arith.constant 0.000000e+00 : f32
    %6 = vector.broadcast %cst_5 : f32 to vector<16x128xf32>
    %7 = arith.maximumf %5, %6 : vector<16x128xf32>
    %c0_6 = arith.constant 0 : index
    %c0_7 = arith.constant 0 : index
    %8 = vector.load %arg4[%c0_6, %c0_7] : memref<128x128xf32, #tpu.memory_space<vmem>>, vector<128x128xf32>
    %cst_8 = arith.constant dense<0.000000e+00> : vector<16x128xf32>
    %9 = tpu.matmul %7, %8, %cst_8 {dimension_numbers = #tpu.dot_dimension_numbers<[1], [0], [0], [1], [0, 0, 1, 1], [], []>} : vector<16x128xf32>, vector<128x128xf32>, vector<16x128xf32> -> vector<16x128xf32>
    %c0_9 = arith.constant 0 : index
    %c0_10 = arith.constant 0 : index
    %10 = vector.load %arg5[%c0_9, %c0_10] : memref<1x128xf32, #tpu.memory_space<vmem>>, vector<1x128xf32>
    %11 = vector.broadcast %10 : vector<1x128xf32> to vector<16x128xf32>
    %12 = arith.addf %9, %11 : vector<16x128xf32>
    %c0_11 = arith.constant 0 : index
    %c0_12 = arith.constant 0 : index
    %13 = vector.load %arg6[%c0_11, %c0_12] : memref<16x128xf32, #tpu.memory_space<vmem>>, vector<16x128xf32>
    tpu.vector_store %arg6[%c0_11, %c0_12], %12 {strides = array<i32>} : memref<16x128xf32, #tpu.memory_space<vmem>>, vector<16x128xf32>,
    return
  }
  func.func @transform_0(%arg0: i32) -> (i32, i32) {
    %c0_i32 = arith.constant 0 : i32
    %c0_i32_0 = arith.constant 0 : i32
    return %arg0, %c0_i32 : i32, i32
  }
  func.func @transform_1(%arg0: i32) -> (i32, i32) {
    %c0_i32 = arith.constant 0 : i32
    %c0_i32_0 = arith.constant 0 : i32
    %c0_i32_1 = arith.constant 0 : i32
    return %c0_i32, %c0_i32_0 : i32, i32
  }
  func.func @transform_2(%arg0: i32) -> (i32, i32) {
    %c0_i32 = arith.constant 0 : i32
    %c0_i32_0 = arith.constant 0 : i32
    %c0_i32_1 = arith.constant 0 : i32
    return %c0_i32, %c0_i32_0 : i32, i32
  }
  func.func @transform_3(%arg0: i32) -> (i32, i32) {
    %c0_i32 = arith.constant 0 : i32
    %c0_i32_0 = arith.constant 0 : i32
    %c0_i32_1 = arith.constant 0 : i32
    return %c0_i32, %c0_i32_0 : i32, i32
  }
  func.func @transform_4(%arg0: i32) -> (i32, i32) {
    %c0_i32 = arith.constant 0 : i32
    %c0_i32_0 = arith.constant 0 : i32
    %c0_i32_1 = arith.constant 0 : i32
    return %c0_i32, %c0_i32_0 : i32, i32
  }
  func.func @transform_5(%arg0: i32) -> (i32, i32) {
    %c0_i32 = arith.constant 0 : i32
    %c0_i32_0 = arith.constant 0 : i32
    return %arg0, %c0_i32 : i32, i32
  }
}

</mosaic_0001>

<bundles_post_ra>
// kernel: feedforward.1
= control target key start
LH: loop header
LB: loop body
LE: loop exit
PB: predicated region body
PF: predicated region fallthrough
CT: control target
= control target key end

     0   :  { %10 = vsyncpa [#allocation3], 0  ;;  %s470_s0 = inlined_call_operand.vmem [shape: f32[16,128], index: 0, kind: input, shape index: {}]   ;;  %s471_s1 = inlined_call_operand.hbm [shape: f32[128,128], index: 1, kind: input, shape index: {}]   ;;  %s472_s2 = inlined_call_operand.vmem [shape: f32[1,128], index: 2, kind: input, shape index: {}]   ;;  %s473_s3 = inlined_call_operand.hbm [shape: f32[128,128], index: 3, kind: input, shape index: {}]   ;;  %s474_s4 = inlined_call_operand.vmem [shape: f32[1,128], index: 4, kind: input, shape index: {}]   ;;  %s475_s5 = inlined_call_operand.vmem [shape: f32[16,128], index: 5, kind: output, shape index: {}]  }
   0x1   :  { %11 = vsyncpa [#allocation5], 0  ;;  %s412_s18 = smov [#allocation2]  }
   0x2   :  { %s19_s19 = sshll.u32 %s412_s18, 4  ;;  %s20_s19 = int_to_ptr.vmem [resolvable:$true] %s19_s19 }
   0x3   :  { %s376_s20 = scalar_lea.vmem %s20_s19, 2048  ;;  %p381_p1 = scmp.lt.s32.totalorder %s20_s19, %s20_s19 }
   0x4   :  { %p377_p0 = scmp.ne.s32.totalorder %s20_s19, %s376_s20  ;;  %p382_p2 = scmp.lt.s32.totalorder %s376_s20, %s376_s20 }
   0x6   :  { %p383_p3 = por %p382_p2, %p381_p1 }
   0x8   :  { %p384_p4 = pnand %p383_p3, %p377_p0 }
   0xa   :  { %387 = shalt.err (!%p384_p4)
}
   0xb   :  { %s413_s21 = smov 128   ;;  %s414_s22 = smov 8  }
   0xc   :  { %25 = dma.hbm_to_vmem [thread:$0]  %s471_s1, 2048, %s20_s19, [#allocation3], %s413_s21, %s413_s21, %s414_s22  }
   0xd   :  { %s415_s25 = smov [#allocation4]  }
   0xe   :  { %s33_s26 = sshll.u32 %s415_s25, 4  ;;  %s34_s26 = int_to_ptr.vmem [resolvable:$true] %s33_s26 }
   0xf   :  { %s396_s27 = scalar_lea.vmem %s34_s26, 2048  ;;  %p401_p6 = scmp.lt.s32.totalorder %s34_s26, %s34_s26 }
  0x10   :  { %p397_p5 = scmp.ne.s32.totalorder %s34_s26, %s396_s27  ;;  %p402_p7 = scmp.lt.s32.totalorder %s396_s27, %s396_s27 }
  0x12   :  { %p403_p8 = por %p402_p7, %p401_p6 }
  0x14   :  { %p404_p9 = pnand %p403_p8, %p397_p5 }
  0x16   :  { %407 = shalt.err (!%p404_p9)
}
  0x17   :  { %39 = dma.hbm_to_vmem [thread:$0]  %s473_s3, 2048, %s34_s26, [#allocation5], %s413_s21, %s413_s21, %s414_s22  }
  0x18   :  { %408 = dma.done.wait [#allocation3], 2048  }
  0x19   :  { %409 = vsyncadd [#allocation3], 4294965248 }
  0x1a   :  { %410 = dma.done.wait [#allocation5], 2048  }
  0x1b   :  { %411 = vsyncadd [#allocation5], 4294965248  ;;  %v65_v0 = vld [vmem:[#allocation2 + $0x78] sm:$0xff]  ;;  %v64_v1 = vld [vmem:[#allocation2 + $0x70] sm:$0xff] }
  0x1c   :  { %294 = vmatprep.subr.mxu0 %v65_v0  ;;  %v63_v2 = vld [vmem:[#allocation2 + $0x68] sm:$0xff]  ;;  %v62_v3 = vld [vmem:[#allocation2 + $0x60] sm:$0xff]  ;;  %v61_v5 = vld [vmem:[#allocation2 + $0x58] sm:$0xff] }
  0x1d   :  { %295 = vmatpush3.msra.mxu0 %v65_v0  ;;  %v48_v4 = vld [vmem:[%s470_s0] sm:$0xff]  ;;  %v165_v6 = vld [vmem:[#allocation4 + $0x78] sm:$0xff]  ;;  %v164_v7 = vld [vmem:[#allocation4 + $0x70] sm:$0xff] }
  0x1e   :  { %296 = vmatprep.subr.mxu0 %v64_v1  ;;  %326 = vmatprep.mubr.f32.mxu0 %v48_v4  ;;  %v60_v8 = vld [vmem:[#allocation2 + $0x50] sm:$0xff]  ;;  %v163_v9 = vld [vmem:[#allocation4 + $0x68] sm:$0xff]  ;;  %v162_v11 = vld [vmem:[#allocation4 + $0x60] sm:$0xff] }
  0x1f   :  { %297 = vmatpush3.msra.mxu0 %v64_v1  ;;  %329 = vmatprep.subr.mxu1 %v165_v6  ;;  %v59_v10 = vld [vmem:[#allocation2 + $0x48] sm:$0xff]  ;;  %v58_v12 = vld [vmem:[#allocation2 + $0x40] sm:$0xff]  ;;  %v161_v13 = vld [vmem:[#allocation4 + $0x58] sm:$0xff] }
  0x20   :  { %298 = vmatprep.subr.mxu0 %v63_v2  ;;  %330 = vmatpush3.msra.mxu1 %v165_v6  ;;  %v57_v14 = vld [vmem:[#allocation2 + $0x38] sm:$0xff]  ;;  %v160_v15 = vld [vmem:[#allocation4 + $0x50] sm:$0xff]  ;;  %v159_v17 = vld [vmem:[#allocation4 + $0x48] sm:$0xff] }
  0x21   :  { %299 = vmatpush3.msra.mxu0 %v63_v2  ;;  %331 = vmatprep.subr.mxu1 %v164_v7  ;;  %v56_v16 = vld [vmem:[#allocation2 + $0x30] sm:$0xff]  ;;  %v55_v18 = vld [vmem:[#allocation2 + $0x28] sm:$0xff]  ;;  %v158_v19 = vld [vmem:[#allocation4 + $0x40] sm:$0xff] }
  0x22   :  { %300 = vmatprep.subr.mxu0 %v62_v3  ;;  %332 = vmatpush3.msra.mxu1 %v164_v7  ;;  %v54_v20 = vld [vmem:[#allocation2 + $0x20] sm:$0xff]  ;;  %v157_v21 = vld [vmem:[#allocation4 + $0x38] sm:$0xff]  ;;  %v156_v23 = vld [vmem:[#allocation4 + $0x30] sm:$0xff] }
  0x23   :  { %301 = vmatpush3.msra.mxu0 %v62_v3  ;;  %333 = vmatprep.subr.mxu1 %v163_v9  ;;  %v53_v22 = vld [vmem:[#allocation2 + $0x18] sm:$0xff]  ;;  %v52_v24 = vld [vmem:[#allocation2 + $0x10] sm:$0xff]  ;;  %v155_v25 = vld [vmem:[#allocation4 + $0x28] sm:$0xff] }
  0x24   :  { %302 = vmatprep.subr.mxu0 %v61_v5  ;;  %334 = vmatpush3.msra.mxu1 %v163_v9  ;;  %v51_v26 = vld [vmem:[#allocation2 + $0x8] sm:$0xff]  ;;  %v154_v27 = vld [vmem:[#allocation4 + $0x20] sm:$0xff]  ;;  %v153_v30 = vld [vmem:[#allocation4 + $0x18] sm:$0xff] }
  0x25   :  { %303 = vmatpush3.msra.mxu0 %v61_v5  ;;  %335 = vmatprep.subr.mxu1 %v162_v11  ;;  %v50_v28 = vld [vmem:[#allocation2] sm:$0xff]  ;;  %v49_v29 = vld [vmem:[%s470_s0 + $0x8] sm:$0xff]  ;;  %v152_v31 = vld [vmem:[#allocation4 + $0x10] sm:$0xff] }
  0x26   :  { %304 = vmatprep.subr.mxu0 %v60_v8  ;;  %336 = vmatpush3.msra.mxu1 %v162_v11  ;;  %v151_v32 = vld [vmem:[#allocation4 + $0x8] sm:$0xff]  ;;  %v150_v33 = vld [vmem:[#allocation4] sm:$0xff] }
  0x27   :  { %305 = vmatpush3.msra.mxu0 %v60_v8  ;;  %337 = vmatprep.subr.mxu1 %v161_v13  ;;  %v256_v34 = vld [vmem:[%s472_s2] ss:$0 sm:$0xff] }
  0x28   :  { %306 = vmatprep.subr.mxu0 %v59_v10  ;;  %338 = vmatpush3.msra.mxu1 %v161_v13  ;;  %v257_v41 = vld [vmem:[%s474_s4] ss:$0 sm:$0xff] }
  0x29   :  { %307 = vmatpush3.msra.mxu0 %v59_v10  ;;  %339 = vmatprep.subr.mxu1 %v160_v15 }
  0x2a   :  { %308 = vmatprep.subr.mxu0 %v58_v12  ;;  %340 = vmatpush3.msra.mxu1 %v160_v15 }
  0x2b   :  { %309 = vmatpush3.msra.mxu0 %v58_v12  ;;  %341 = vmatprep.subr.mxu1 %v159_v17 }
  0x2c   :  { %310 = vmatprep.subr.mxu0 %v57_v14  ;;  %342 = vmatpush3.msra.mxu1 %v159_v17 }
  0x2d   :  { %311 = vmatpush3.msra.mxu0 %v57_v14  ;;  %343 = vmatprep.subr.mxu1 %v158_v19 }
  0x2e   :  { %312 = vmatprep.subr.mxu0 %v56_v16  ;;  %344 = vmatpush3.msra.mxu1 %v158_v19 }
  0x2f   :  { %313 = vmatpush3.msra.mxu0 %v56_v16  ;;  %345 = vmatprep.subr.mxu1 %v157_v21 }
  0x30   :  { %314 = vmatprep.subr.mxu0 %v55_v18  ;;  %346 = vmatpush3.msra.mxu1 %v157_v21 }
  0x31   :  { %315 = vmatpush3.msra.mxu0 %v55_v18  ;;  %347 = vmatprep.subr.mxu1 %v156_v23 }
  0x32   :  { %316 = vmatprep.subr.mxu0 %v54_v20  ;;  %348 = vmatpush3.msra.mxu1 %v156_v23 }
  0x33   :  { %317 = vmatpush3.msra.mxu0 %v54_v20  ;;  %349 = vmatprep.subr.mxu1 %v155_v25 }
  0x34   :  { %318 = vmatprep.subr.mxu0 %v53_v22  ;;  %350 = vmatpush3.msra.mxu1 %v155_v25 }
  0x35   :  { %319 = vmatpush3.msra.mxu0 %v53_v22  ;;  %351 = vmatprep.subr.mxu1 %v154_v27 }
  0x36   :  { %320 = vmatprep.subr.mxu0 %v52_v24  ;;  %352 = vmatpush3.msra.mxu1 %v154_v27 }
  0x37   :  { %321 = vmatpush3.msra.mxu0 %v52_v24  ;;  %353 = vmatprep.subr.mxu1 %v153_v30 }
  0x38   :  { %322 = vmatprep.subr.mxu0 %v51_v26  ;;  %354 = vmatpush3.msra.mxu1 %v153_v30 }
  0x39   :  { %323 = vmatpush3.msra.mxu0 %v51_v26  ;;  %355 = vmatprep.subr.mxu1 %v152_v31 }
  0x3a   :  { %324 = vmatprep.subr.mxu0 %v50_v28  ;;  %356 = vmatpush3.msra.mxu1 %v152_v31 }
  0x3b   :  { %325 = vmatpush3.msra.mxu0 %v50_v28  ;;  %357 = vmatprep.subr.mxu1 %v151_v32 }
  0x3c   :  { %327 = vmatmul.mubr.f32.vlgmr.msra.gmra.mxu0 %v49_v29  ;;  %358 = vmatpush3.msra.mxu1 %v151_v32 }
  0x3d   :  { %359 = vmatprep.subr.mxu1 %v150_v33 }
  0x3e   :  { %360 = vmatpush3.msra.mxu1 %v150_v33 }
  0xfc   :  { %v328_v35 = vpop.f32.mrf.mxu0 }
  0xfd   :  { %v145_v36 = vadd.f32 %v328_v35, %v256_v34 }
  0xfe   :  { %v139_v37 = vpop.f32.mrf.mxu0 }
  0xff   :  { %v140_v38 = vadd.f32 %v256_v34, %v139_v37  ;;  %v149_v40 = vmax.f32 %v145_v36, 0.0 }
 0x101   :  { %v148_v39 = vmax.f32 %v140_v38, 0.0 }
 0x103   :  { %361 = vmatprep.mubr.f32.mxu1 %v148_v39 }
 0x104   :  { %362 = vmatmul.mubr.f32.vlgmr.msra.gmra.mxu1 %v149_v40 }
 0x1c4   :  { %v363_v42 = vpop.f32.mrf.mxu1 }
 0x1c5   :  { %v245_v43 = vadd.f32 %v363_v42, %v257_v41 }
 0x1c6   :  { %v239_v44 = vpop.f32.mrf.mxu1 }
 0x1c7   :  { %249 = vst [vmem:[%s475_s5 + $0x8] sm:$0xff] %v245_v43  ;;  %v240_v45 = vadd.f32 %v257_v41, %v239_v44 }
 0x1c9   :  { %248 = vst [vmem:[%s475_s5] sm:$0xff] %v240_v45 }
 0x1ca   :  { %254 = vsyncpa [#allocation3], 1 }
 0x1cb   :  { %255 = vsyncpa [#allocation5], 1 }

</bundles_post_ra>
